<compile_context>
chip_gen: v7x
topology: tpu7x:2x2x1
jax: 0.10.0
libtpu: 0.0.40
codegen_flags: <defaults>
</compile_context>

<pallas_src>
import functools

import jax
import jax.numpy as jnp
from jax import lax
from jax.experimental import pallas as pl
from jax.experimental.pallas import tpu as pltpu


# ------------------------------- Pallas kernel -------------------------------

def _proj_ln_kernel(p_ref, w_ref, b_ref, g_ref, beta_ref, o_ref):
    # p_ref: (tm, K) bf16, w_ref: (K, E) bf16, b/g/beta: (1, E) f32,
    # o_ref: (tm, E) f32.
    acc = jnp.dot(p_ref[...], w_ref[...],
                  preferred_element_type=jnp.float32)   # MXU, f32 accumulate
    acc = acc + b_ref[...]
    # LayerNorm over last dim (PyTorch: biased variance, eps=1e-5), all f32.
    mean = jnp.mean(acc, axis=-1, keepdims=True)
    cent = acc - mean
    var = jnp.mean(cent * cent, axis=-1, keepdims=True)
    y = cent * lax.rsqrt(var + 1e-5)
    o_ref[...] = (y * g_ref[...] + beta_ref[...]).astype(o_ref.dtype)


def _round_up(a, b):
    return ((a + b - 1) // b) * b


def proj_layernorm(patches, weight_ke, bias, gamma, beta, *, tm_target=512):
    """patches: (M, K) bf16, weight_ke: (K, E) bf16, bias/gamma/beta: (E,) f32."""
    M, K = patches.shape
    E = weight_ke.shape[1]

    # Row tile: as large as practical (per-grid-step overhead ~0.35 us; >=512
    # gets close to the HBM roofline), multiple of 32 (bf16 sublane packing),
    # but clamped so the "parallel" grid keeps >= 2 steps for v7x's 2 TCs.
    tm = max(32, min(_round_up(tm_target, 32), _round_up((M + 1) // 2, 32)))
    M_pad = _round_up(M, tm)
    if M_pad != M:
        patches = jnp.pad(patches, ((0, M_pad - M), (0, 0)))

    out = pl.pallas_call(
        _proj_ln_kernel,
        out_shape=jax.ShapeDtypeStruct((M_pad, E), jnp.float32),
        grid_spec=pltpu.PrefetchScalarGridSpec(
            num_scalar_prefetch=0,
            grid=(M_pad // tm,),
            in_specs=[
                # If profiling shows exposed input DMA, add
                # pipeline_mode=pl.Buffered(3) here (< 1 MiB extra VMEM).
                pl.BlockSpec((tm, K), lambda i: (i, 0)),
                pl.BlockSpec((K, E), lambda i: (0, 0)),
                pl.BlockSpec((1, E), lambda i: (0, 0)),
                pl.BlockSpec((1, E), lambda i: (0, 0)),
                pl.BlockSpec((1, E), lambda i: (0, 0)),
            ],
            out_specs=pl.BlockSpec((tm, E), lambda i: (i, 0)),
        ),
        compiler_params=pltpu.CompilerParams(
            dimension_semantics=("parallel",)),
    )(patches, weight_ke, bias.reshape(1, E), gamma.reshape(1, E),
      beta.reshape(1, E))
    return out[:M]


# ------------------------------- JAX glue ------------------------------------

def _im2col_3d_k_minor(x, ksize, stride, padding, storage_dtype):
    """x: (B, C, D, H, W) -> patches (B*Do*Ho*Wo, kd*kh*kw*C) in storage_dtype.

    The patch matrix is produced K-minor directly: rows follow PyTorch's
    flatten(2).transpose(1,2) order (b, d', h', w'); columns are ordered
    (kd, kh, kw, C). Only x itself (~3.4x smaller than the patch matrix) is
    moved to channels-last; no full-size relayout of the patch tensor happens.
    """
    B, C, D, H, W = x.shape
    kd, kh, kw = ksize
    sd, sh, sw = stride
    pd, ph, pw = padding
    xcl = jnp.transpose(x, (0, 2, 3, 4, 1)).astype(storage_dtype)  # (B,D,H,W,C)
    xp = jnp.pad(xcl, ((0, 0), (pd, pd), (ph, ph), (pw, pw), (0, 0)))
    Dp, Hp, Wp = D + 2 * pd, H + 2 * ph, W + 2 * pw
    Do = (Dp - kd) // sd + 1
    Ho = (Hp - kh) // sh + 1
    Wo = (Wp - kw) // sw + 1
    cols = []
    for dz in range(kd):
        for dy in range(kh):
            for dx in range(kw):
                cols.append(xp[:,
                               dz: dz + sd * (Do - 1) + 1: sd,
                               dy: dy + sh * (Ho - 1) + 1: sh,
                               dx: dx + sw * (Wo - 1) + 1: sw, :])
    patches = jnp.stack(cols, axis=4)          # (B, Do, Ho, Wo, kd*kh*kw, C)
    patches = patches.reshape(B * Do * Ho * Wo, kd * kh * kw * C)
    return patches, (Do, Ho, Wo)


def overlap_patch_embed_3d(x, params, *, patch_size, stride,
                           storage_dtype=jnp.bfloat16, tm_target=512):
    """Forward of OverlapPatchEmbed3d. x: (B, C, D, H, W) f32."""
    kd, kh, kw = patch_size
    padding = (0, kh // 2, kw // 2)
    B, C = x.shape[0], x.shape[1]
    E = params["proj_w"].shape[0]

    patches, (Do, Ho, Wo) = _im2col_3d_k_minor(
        x, patch_size, (stride, stride, stride), padding, storage_dtype)
    # Conv3d weight (E, C, kd, kh, kw) -> (K, E), K ordered (kd, kh, kw, C)
    # to match the K-minor patch layout. ~14 KB, free to permute.
    w_ke = jnp.transpose(params["proj_w"], (2, 3, 4, 1, 0)).reshape(
        kd * kh * kw * C, E).astype(storage_dtype)

    out = proj_layernorm(patches, w_ke,
                         params["proj_b"].astype(jnp.float32),
                         params["ln_w"].astype(jnp.float32),
                         params["ln_b"].astype(jnp.float32),
                         tm_target=tm_target)
    return out.reshape(B, Do * Ho * Wo, E), Do, Ho, Wo


# ------------------------------- reference -----------------------------------

def reference(x, params, *, patch_size, stride, storage_dtype=None):
    """Plain-XLA reference. If storage_dtype is given, x and the conv weight
    are rounded to it first (matching the kernel's bf16 storage); all math is
    still f32."""
    kd, kh, kw = patch_size
    xr, wr = x, params["proj_w"]
    if storage_dtype is not None:
        xr = xr.astype(storage_dtype).astype(jnp.float32)
        wr = wr.astype(storage_dtype).astype(jnp.float32)
    y = lax.conv_general_dilated(
        xr, wr,
        window_strides=(stride, stride, stride),
        padding=[(0, 0), (kh // 2, kh // 2), (kw // 2, kw // 2)],
        dimension_numbers=("NCDHW", "OIDHW", "NCDHW"),
        precision=lax.Precision.HIGHEST)
    y = y + params["proj_b"].reshape(1, -1, 1, 1, 1)
    B, E, Do, Ho, Wo = y.shape
    y = y.reshape(B, E, Do * Ho * Wo).transpose(0, 2, 1)   # (B, N, E)
    mean = jnp.mean(y, axis=-1, keepdims=True)
    var = jnp.mean((y - mean) ** 2, axis=-1, keepdims=True)
    y = (y - mean) * lax.rsqrt(var + 1e-5)
    y = y * params["ln_w"] + params["ln_b"]
    return y, Do, Ho, Wo


# --------------------------------- main ---------------------------------------

if __name__ == "__main__":
    # Small config consistent with the module: patch_size=3, stride=2,
    # in_chans=4, embed_dim=32, input volume (B, C, D, H, W) = (2, 4, 8, 16, 16)
    patch_size = (3, 3, 3)
    stride = 2
    in_chans = 4
    embed_dim = 32
    B, D, H, W = 2, 8, 16, 16

    key = jax.random.PRNGKey(0)
    kx, kw_, kb, kg, kbeta = jax.random.split(key, 5)
    x = jax.random.normal(kx, (B, in_chans, D, H, W), dtype=jnp.float32)

    # Conv3d.weight ~ N(0, 0.01) as in _init_weights; small non-zero bias /
    # LayerNorm affine so those code paths are exercised by the check.
    params = {
        "proj_w": 0.01 * jax.random.normal(
            kw_, (embed_dim, in_chans) + patch_size, dtype=jnp.float32),
        "proj_b": 0.05 * jax.random.normal(kb, (embed_dim,), jnp.float32),
        "ln_w": 1.0 + 0.05 * jax.random.normal(kg, (embed_dim,), jnp.float32),
        "ln_b": 0.05 * jax.random.normal(kbeta, (embed_dim,), jnp.float32),
    }

    fwd = jax.jit(functools.partial(overlap_patch_embed_3d,
                                    patch_size=patch_size, stride=stride))
    out, Do, Ho, Wo = fwd(x, params)
    jax.block_until_ready(out)

    # Tight check: reference fed the same bf16-rounded inputs, f32 math ->
    # only accumulation order differs from the kernel.
    ref_q, rDo, rHo, rWo = reference(x, params, patch_size=patch_size,
                                     stride=stride, storage_dtype=jnp.bfloat16)
    # Loose check: full-f32 PyTorch-equivalent reference; the only difference
    # is the bf16 storage rounding of x / conv weight.
    ref_f32, _, _, _ = reference(x, params, patch_size=patch_size,
                                 stride=stride)

    assert (Do, Ho, Wo) == (rDo, rHo, rWo)
    assert out.shape == (B, Do * Ho * Wo, embed_dim)
    assert jnp.allclose(out, ref_q, atol=1e-3, rtol=1e-3), (
        float(jnp.max(jnp.abs(out - ref_q))))
    assert jnp.allclose(out, ref_f32, atol=5e-2, rtol=5e-2), (
        float(jnp.max(jnp.abs(out - ref_f32))))

    print("KERNEL_OK")
</pallas_src>

<mosaic_0001>
module attributes {stable_mosaic.version = 11 : i64} {
  func.func @_proj_ln_kernel(%arg0: i32, %arg1: memref<192x108xbf16, #tpu.memory_space<vmem>>, %arg2: memref<108x32xbf16, #tpu.memory_space<vmem>>, %arg3: memref<1x32xf32, #tpu.memory_space<vmem>>, %arg4: memref<1x32xf32, #tpu.memory_space<vmem>>, %arg5: memref<1x32xf32, #tpu.memory_space<vmem>>, %arg6: memref<192x32xf32, #tpu.memory_space<vmem>>) attributes {dimension_semantics = [#tpu.dimension_semantics<parallel>], iteration_bounds = array<i64: 2>, scalar_prefetch = 0 : i64, scratch_operands = 0 : i64, tpu.core_type = #tpu.core_type<tc>, window_params = [{transform_indices = @transform_0, window_bounds = array<i64: 192, 108>}, {pipeline_mode = #tpu.pipeline_mode<synchronous>, transform_indices = @transform_1, window_bounds = array<i64: 108, 32>}, {pipeline_mode = #tpu.pipeline_mode<synchronous>, transform_indices = @transform_2, window_bounds = array<i64: 1, 32>}, {pipeline_mode = #tpu.pipeline_mode<synchronous>, transform_indices = @transform_3, window_bounds = array<i64: 1, 32>}, {pipeline_mode = #tpu.pipeline_mode<synchronous>, transform_indices = @transform_4, window_bounds = array<i64: 1, 32>}, {transform_indices = @transform_5, window_bounds = array<i64: 192, 32>}]} {
    %c0 = arith.constant 0 : index
    %c0_0 = arith.constant 0 : index
    %0 = vector.load %arg1[%c0, %c0_0] : memref<192x108xbf16, #tpu.memory_space<vmem>>, vector<192x108xbf16>
    %c0_1 = arith.constant 0 : index
    %c0_2 = arith.constant 0 : index
    %1 = vector.load %arg2[%c0_1, %c0_2] : memref<108x32xbf16, #tpu.memory_space<vmem>>, vector<108x32xbf16>
    %cst = arith.constant dense<0.000000e+00> : vector<192x32xf32>
    %2 = tpu.matmul %0, %1, %cst {dimension_numbers = #tpu.dot_dimension_numbers<[1], [0], [0], [1], [0, 0, 1, 1], [], []>} : vector<192x108xbf16>, vector<108x32xbf16>, vector<192x32xf32> -> vector<192x32xf32>
    %c0_3 = arith.constant 0 : index
    %c0_4 = arith.constant 0 : index
    %3 = vector.load %arg3[%c0_3, %c0_4] : memref<1x32xf32, #tpu.memory_space<vmem>>, vector<1x32xf32>
    %4 = vector.broadcast %3 : vector<1x32xf32> to vector<192x32xf32>
    %5 = arith.addf %2, %4 : vector<192x32xf32>
    %cst_5 = arith.constant dense<0.000000e+00> : vector<192xf32>
    %6 = vector.multi_reduction <add>, %5, %cst_5 [1] : vector<192x32xf32> to vector<192xf32>
    %7 = vector.shape_cast %6 : vector<192xf32> to vector<192x1xf32>
    %cst_6 = arith.constant 3.200000e+01 : f32
    %8 = vector.broadcast %cst_6 : f32 to vector<192x1xf32>
    %9 = arith.divf %7, %8 : vector<192x1xf32>
    %10 = vector.broadcast %9 : vector<192x1xf32> to vector<192x32xf32>
    %11 = arith.subf %5, %10 : vector<192x32xf32>
    %12 = arith.mulf %11, %11 : vector<192x32xf32>
    %cst_7 = arith.constant dense<0.000000e+00> : vector<192xf32>
    %13 = vector.multi_reduction <add>, %12, %cst_7 [1] : vector<192x32xf32> to vector<192xf32>
    %14 = vector.shape_cast %13 : vector<192xf32> to vector<192x1xf32>
    %cst_8 = arith.constant 3.200000e+01 : f32
    %15 = vector.broadcast %cst_8 : f32 to vector<192x1xf32>
    %16 = arith.divf %14, %15 : vector<192x1xf32>
    %cst_9 = arith.constant 9.99999974E-6 : f32
    %17 = vector.broadcast %cst_9 : f32 to vector<192x1xf32>
    %18 = arith.addf %16, %17 : vector<192x1xf32>
    %19 = math.rsqrt %18 : vector<192x1xf32>
    %20 = vector.broadcast %19 : vector<192x1xf32> to vector<192x32xf32>
    %21 = arith.mulf %11, %20 : vector<192x32xf32>
    %c0_10 = arith.constant 0 : index
    %c0_11 = arith.constant 0 : index
    %22 = vector.load %arg4[%c0_10, %c0_11] : memref<1x32xf32, #tpu.memory_space<vmem>>, vector<1x32xf32>
    %23 = vector.broadcast %22 : vector<1x32xf32> to vector<192x32xf32>
    %24 = arith.mulf %21, %23 : vector<192x32xf32>
    %c0_12 = arith.constant 0 : index
    %c0_13 = arith.constant 0 : index
    %25 = vector.load %arg5[%c0_12, %c0_13] : memref<1x32xf32, #tpu.memory_space<vmem>>, vector<1x32xf32>
    %26 = vector.broadcast %25 : vector<1x32xf32> to vector<192x32xf32>
    %27 = arith.addf %24, %26 : vector<192x32xf32>
    %c0_14 = arith.constant 0 : index
    %c0_15 = arith.constant 0 : index
    %28 = vector.load %arg6[%c0_14, %c0_15] : memref<192x32xf32, #tpu.memory_space<vmem>>, vector<192x32xf32>
    tpu.vector_store %arg6[%c0_14, %c0_15], %27 {strides = array<i32>} : memref<192x32xf32, #tpu.memory_space<vmem>>, vector<192x32xf32>,
    return
  }
  func.func @transform_0(%arg0: i32) -> (i32, i32) {
    %c0_i32 = arith.constant 0 : i32
    %c0_i32_0 = arith.constant 0 : i32
    return %arg0, %c0_i32 : i32, i32
  }
  func.func @transform_1(%arg0: i32) -> (i32, i32) {
    %c0_i32 = arith.constant 0 : i32
    %c0_i32_0 = arith.constant 0 : i32
    %c0_i32_1 = arith.constant 0 : i32
    return %c0_i32, %c0_i32_0 : i32, i32
  }
  func.func @transform_2(%arg0: i32) -> (i32, i32) {
    %c0_i32 = arith.constant 0 : i32
    %c0_i32_0 = arith.constant 0 : i32
    %c0_i32_1 = arith.constant 0 : i32
    return %c0_i32, %c0_i32_0 : i32, i32
  }
  func.func @transform_3(%arg0: i32) -> (i32, i32) {
    %c0_i32 = arith.constant 0 : i32
    %c0_i32_0 = arith.constant 0 : i32
    %c0_i32_1 = arith.constant 0 : i32
    return %c0_i32, %c0_i32_0 : i32, i32
  }
  func.func @transform_4(%arg0: i32) -> (i32, i32) {
    %c0_i32 = arith.constant 0 : i32
    %c0_i32_0 = arith.constant 0 : i32
    %c0_i32_1 = arith.constant 0 : i32
    return %c0_i32, %c0_i32_0 : i32, i32
  }
  func.func @transform_5(%arg0: i32) -> (i32, i32) {
    %c0_i32 = arith.constant 0 : i32
    %c0_i32_0 = arith.constant 0 : i32
    return %arg0, %c0_i32 : i32, i32
  }
}

</mosaic_0001>

<bundles_post_ra>
// kernel: overlap_patch_embed_3d.1
= control target key start
LH: loop header
LB: loop body
LE: loop exit
PB: predicated region body
PF: predicated region fallthrough
CT: control target
= control target key end

     0   :  { %s1230_s18 = smov 0   ;;  %s1699_s0 = inlined_call_operand.vmem [shape: bf16[384,108], index: 0, kind: input, shape index: {}]   ;;  %s1700_s1 = inlined_call_operand.vmem [shape: bf16[108,32], index: 1, kind: input, shape index: {}]   ;;  %s1701_s2 = inlined_call_operand.vmem [shape: f32[1,32], index: 2, kind: input, shape index: {}]   ;;  %s1702_s3 = inlined_call_operand.vmem [shape: f32[1,32], index: 3, kind: input, shape index: {}]   ;;  %s1703_s4 = inlined_call_operand.vmem [shape: f32[1,32], index: 4, kind: input, shape index: {}]   ;;  %s1704_s5 = inlined_call_operand.vmem [shape: f32[384,32], index: 5, kind: output, shape index: {}]  }
   0x1 LB: > { %s1001_s19 = sadd.s32 4294967295, %s1198_s18   ;;  %p1005_p0 = scmp.ge.s32.totalorder %s1198_s18, 1  ;;  %s1198_s18 = sphi %s1230_s18, %s15_s18  }
   0x2   : > { %p188_p1 = scmp.lt.s32.totalorder %s1198_s18, 3 }
   0x4   : > { %p189_p2 = pnand %p1005_p0, %p188_p1 }
   0x5   : > { %v1125_v0 = vld [vmem:[%s1700_s1] sm:$0xff] (!%p189_p2)   ;;  %v1126_v1 = vld [vmem:[%s1700_s1 + $0x8] sm:$0xff] (!%p189_p2)   ;;  %s216_s24 = smul.u32 (!%p189_p2), 24, %s1001_s19  ;;  %v1127_v2 = vld [vmem:[%s1700_s1 + $0x10] sm:$0xff] (!%p189_p2)   ;;  %vm375_vm0 = vcmask (!%p189_p2), 883712   ;;  %vm412_vm1 = vcmask (!%p189_p2), 1045504  }
   0x6   : > { %192 = sbr.rel (%p189_p2) target bundleno = 610 (0x262), region = 40  ;;  %1063 = vmatprep.subr.bf16.mxu0 (!%p189_p2), %v1125_v0  ;;  %1101 = vmatprep.subr.bf16.mxu1 (!%p189_p2), %v1125_v0  ;;  %v1128_v3 = vld [vmem:[%s1700_s1 + $0x18] sm:$0xff] (!%p189_p2)   ;;  %v1129_v6 = vld [vmem:[%s1700_s1 + $0x20] sm:$0xff] (!%p189_p2)   ;;  %v1130_v7 = vld [vmem:[%s1700_s1 + $0x28] sm:$0xff] (!%p189_p2)   ;;  %vm545_vm2 = vcmask (!%p189_p2), 261120  }
   0x7   : > { %1064 = vmatpush3.bf16.msra.mxu0 (!%p189_p2), %v1125_v0  ;;  %1108 = vmatpush3.bf16.msra.mxu1 (!%p189_p2), %v1125_v0  ;;  %p217_p3 = scmp.lt.s32.totalorder (!%p189_p2), %s216_s24, 47  ;;  %v1131_v8 = vld [vmem:[%s1700_s1 + $0x30] sm:$0x3f] (!%p189_p2)   ;;  %v1294_v20 = vld [vmem:[%s1701_s2] ss:$0 sm:$0xff] (!%p189_p2) }
   0x8   : > { %1065 = vmatprep.subr.bf16.mxu0 (!%p189_p2), %v1126_v1  ;;  %1102 = vmatprep.subr.bf16.mxu1 (!%p189_p2), %v1126_v1  ;;  %v414_v9 = vsel (!%p189_p2), %vm412_vm1, %v1131_v8, 0 }
   0xb   : > { %1066 = vmatpush3.bf16.msra.mxu0 (!%p189_p2), %v1126_v1  ;;  %1109 = vmatpush3.bf16.msra.mxu1 (!%p189_p2), %v1126_v1 }
   0xc   : > { %1067 = vmatprep.subr.bf16.mxu0 (!%p189_p2), %v1127_v2  ;;  %1103 = vmatprep.subr.bf16.mxu1 (!%p189_p2), %v1127_v2 }
   0xd   : > { %s1706_s24 = smov (!%p217_p3, %s216_s24), 47 }
   0xe   : > { %s1006_s27 = sshll.u32 %s1706_s24, 2  ;;  %s1007_s19 = sshll.u32 %s1706_s24, 3 }
   0xf   : > { %s1256_s7 = scalar_lea.vmem %s1699_s0, %s1006_s27  ;;  %1068 = vmatpush3.bf16.msra.mxu0 %v1127_v2  ;;  %1110 = vmatpush3.bf16.msra.mxu1 %v1127_v2  ;;  %s1576_s24 = scalar_lea.vmem %s1704_s5, %s1007_s19 }
  0x10   : > { %v1132_v4 = vld [vmem:[%s1256_s7] sm:$0xff]   ;;  %v1133_v5 = vld [vmem:[%s1256_s7 + $0x30] sm:$0xff]   ;;  %1069 = vmatprep.subr.bf16.mxu0 %v1128_v3  ;;  %1104 = vmatprep.subr.bf16.mxu1 %v1128_v3  ;;  %v1134_v10 = vld [vmem:[%s1256_s7 + $0x8] sm:$0xff]  }
  0x11   : > { %1077 = vmatprep.mubr.msk.bf16.mxu0 %vm375_vm0, %v1132_v4  ;;  %1089 = vmatprep.mubr.msk.bf16.mxu1 %vm375_vm0, %v1133_v5  ;;  %v1135_v11 = vld [vmem:[%s1256_s7 + $0x38] sm:$0xff]   ;;  %v1136_v12 = vld [vmem:[%s1256_s7 + $0x10] sm:$0xff]   ;;  %v1138_v13 = vld [vmem:[%s1256_s7 + $0x40] sm:$0xff]  }
  0x12   : > { %v1137_v14 = vld [vmem:[%s1256_s7 + $0x18] sm:$0xff]   ;;  %v1139_v15 = vld [vmem:[%s1256_s7 + $0x48] sm:$0xff]   ;;  %v1140_v16 = vld [vmem:[%s1256_s7 + $0x20] sm:$0xff]  }
  0x13   : > { %1070 = vmatpush3.bf16.msra.mxu0 %v1128_v3  ;;  %1111 = vmatpush3.bf16.msra.mxu1 %v1128_v3  ;;  %v1142_v17 = vld [vmem:[%s1256_s7 + $0x50] sm:$0xff]   ;;  %v1141_v18 = vld [vmem:[%s1256_s7 + $0x28] sm:$0xff]   ;;  %v1143_v19 = vld [vmem:[%s1256_s7 + $0x58] sm:$0xff]  }
  0x14   : > { %1071 = vmatprep.subr.bf16.mxu0 %v1129_v6  ;;  %1105 = vmatprep.subr.bf16.mxu1 %v1129_v6 }
  0x17   : > { %1072 = vmatpush3.bf16.msra.mxu0 %v1129_v6  ;;  %1112 = vmatpush3.bf16.msra.mxu1 %v1129_v6 }
  0x18   : > { %1073 = vmatprep.subr.bf16.mxu0 %v1130_v7  ;;  %1106 = vmatprep.subr.bf16.mxu1 %v1130_v7 }
  0x1b   : > { %1074 = vmatpush3.bf16.msra.mxu0 %v1130_v7  ;;  %1113 = vmatpush3.bf16.msra.mxu1 %v1130_v7 }
  0x1c   : > { %1115 = vmatprep.subr.msk.bf16.mxu0 %vm412_vm1, %v1131_v8  ;;  %1116 = vmatprep.subr.msk.bf16.mxu1 %vm412_vm1, %v1131_v8 }
  0x1f   : > { %1076 = vmatpush3.bf16.msra.mxu0 %v414_v9  ;;  %1114 = vmatpush3.bf16.msra.mxu1 %v414_v9 }
  0x22   : > { %1078 = vmatmul.mubr.msk.bf16.vlgmr.msra.gmra.mrb[0].mxu0 %vm375_vm0, %v1134_v10  ;;  %1090 = vmatmul.mubr.msk.bf16.vlgmr.msra.gmra.mrb[0].mxu1 %vm375_vm0, %v1135_v11 }
  0x23   : > { %1081 = vmatprep.mubr.msk.bf16.mxu0 %vm375_vm0, %v1136_v12  ;;  %1093 = vmatprep.mubr.msk.bf16.mxu1 %vm375_vm0, %v1138_v13 }
  0x2a   : > { %1082 = vmatmul.mubr.msk.bf16.gmra.mrb[4].mxu0 %vm375_vm0, %v1137_v14  ;;  %1094 = vmatmul.mubr.msk.bf16.gmra.mrb[4].mxu1 %vm375_vm0, %v1139_v15 }
  0x2b   : > { %1085 = vmatprep.mubr.msk.bf16.mxu0 %vm375_vm0, %v1140_v16  ;;  %1097 = vmatprep.mubr.msk.bf16.mxu1 %vm375_vm0, %v1142_v17 }
  0x32   : > { %1086 = vmatmul.mubr.msk.bf16.gmra.mrb[8].mxu0 %vm375_vm0, %v1141_v18  ;;  %1098 = vmatmul.mubr.msk.bf16.gmra.mrb[8].mxu1 %vm375_vm0, %v1143_v19 }
  0xf5   : > { %v1079_v21 = vpop.f32.mrb[0].mxu0  ;;  %v1091_v22 = vpop.f32.mrb[0].mxu1 }
  0xf6   : > { %v1297_v23 = vadd.f32 %v1079_v21, %v1294_v20  ;;  %v1300_v24 = vadd.f32 %v1091_v22, %v1294_v20  ;;  %v450_v25 = vpop.f32.mrb[1].mxu0  ;;  %v498_v26 = vpop.f32.mrb[1].mxu1 }
  0xf7   : > { %v1080_v27 = vpop.f32.mrb[2].mxu0  ;;  %v1092_v28 = vpop.f32.mrb[2].mxu1  ;;  %v1303_v29 = vadd.f32 %v1294_v20, %v450_v25  ;;  %v1313_v35 = vadd.f32 %v1294_v20, %v498_v26 }
  0xf8   : > { %v1306_v30 = vadd.f32 %v1080_v27, %v1294_v20  ;;  %v453_v31 = vpop.f32.mrb[3].mxu0  ;;  %v501_v32 = vpop.f32.mrb[3].mxu1  ;;  %v588_v33 = vsel %vm545_vm2, %v1300_v24, 0.0  ;;  %v552_v34 = vsel %vm545_vm2, %v1297_v23, 0.0  ;;  %v1316_v36 = vadd.f32 %v1092_v28, %v1294_v20 }
  0xf9   : > { %589 = vadd.xlane.f32.xlu0 %v588_v33  ;;  %553 = vadd.xlane.f32.xlu1 %v552_v34  ;;  %v546_v38 = vsel %vm545_vm2, %v1303_v29, 0.0  ;;  %v1323_v45 = vadd.f32 %v1294_v20, %v453_v31  ;;  %v1326_v46 = vadd.f32 %v1294_v20, %v501_v32  ;;  %v582_v48 = vsel %vm545_vm2, %v1313_v35, 0.0 }
  0xfa   : > { %v555_v37 = vsel %vm545_vm2, %v1306_v30, 0.0  ;;  %v591_v47 = vsel %vm545_vm2, %v1316_v36, 0.0 }
  0xfb   : > { %v585_v53 = vsel %vm545_vm2, %v1326_v46, 0.0  ;;  %v549_v54 = vsel %vm545_vm2, %v1323_v45, 0.0 }
  0xfd   : > { %556 = vadd.xlane.f32.xlu1 %v555_v37  ;;  %547 = vadd.xlane.f32.xlu0 %v546_v38  ;;  %v1083_v39 = vpop.f32.mrb[4].mxu0  ;;  %v1095_v40 = vpop.f32.mrb[4].mxu1 }
  0xfe   : > { %v466_v41 = vpop.f32.mrb[5].mxu0  ;;  %v514_v42 = vpop.f32.mrb[5].mxu1  ;;  %v1333_v51 = vadd.f32 %v1083_v39, %v1294_v20  ;;  %v1343_v57 = vadd.f32 %v1095_v40, %v1294_v20 }
  0xff   : > { %v1084_v43 = vpop.f32.mrb[6].mxu0  ;;  %v1096_v44 = vpop.f32.mrb[6].mxu1  ;;  %v1357_v5 = vadd.f32 %v1294_v20, %v466_v41  ;;  %v1363_v7 = vadd.f32 %v1294_v20, %v514_v42 }
 0x100   : > { %v469_v49 = vpop.f32.mrb[7].mxu0  ;;  %v517_v50 = vpop.f32.mrb[7].mxu1  ;;  %v1336_v52 = vadd.f32 %v1084_v43, %v1294_v20  ;;  %v1346_v58 = vadd.f32 %v1096_v44, %v1294_v20  ;;  %v564_v60 = vsel %vm545_vm2, %v1333_v51, 0.0  ;;  %v600_v4 = vsel %vm545_vm2, %v1343_v57, 0.0 }
 0x101   : > { %592 = vadd.xlane.f32.xlu1 %v591_v47  ;;  %583 = vadd.xlane.f32.xlu0 %v582_v48  ;;  %v1360_v6 = vadd.f32 %v1294_v20, %v469_v49  ;;  %v1366_v8 = vadd.f32 %v1294_v20, %v517_v50  ;;  %v558_v10 = vsel %vm545_vm2, %v1357_v5, 0.0  ;;  %v594_v14 = vsel %vm545_vm2, %v1363_v7, 0.0 }
 0x102   : > { %v567_v59 = vsel %vm545_vm2, %v1336_v52, 0.0  ;;  %v603_v3 = vsel %vm545_vm2, %v1346_v58, 0.0 }
 0x103   : > { %v561_v9 = vsel %vm545_vm2, %v1360_v6, 0.0  ;;  %v597_v13 = vsel %vm545_vm2, %v1366_v8, 0.0 }
 0x105   : > { %586 = vadd.xlane.f32.xlu1 %v585_v53  ;;  %550 = vadd.xlane.f32.xlu0 %v549_v54  ;;  %v1087_v55 = vpop.f32.mrb[8].mxu0  ;;  %v1099_v56 = vpop.f32.mrb[8].mxu1 }
 0x106   : > { %v482_v61 = vpop.f32.mrb[9].mxu0  ;;  %v530_v62 = vpop.f32.mrb[9].mxu1  ;;  %v1373_v11 = vadd.f32 %v1087_v55, %v1294_v20  ;;  %v1407_v28 = vadd.f32 %v1099_v56, %v1294_v20 }
 0x107   : > { %v1088_v63 = vpop.f32.mrb[10].mxu0  ;;  %v1100_v0 = vpop.f32.mrb[10].mxu1  ;;  %v1387_v17 = vadd.f32 %v1294_v20, %v482_v61  ;;  %v1393_v19 = vadd.f32 %v1294_v20, %v530_v62 }
 0x108   : > { %v485_v1 = vpop.f32.mrb[11].mxu0  ;;  %v533_v2 = vpop.f32.mrb[11].mxu1  ;;  %v1376_v12 = vadd.f32 %v1088_v63, %v1294_v20  ;;  %v576_v16 = vsel %vm545_vm2, %v1373_v11, 0.0  ;;  %v1410_v31 = vadd.f32 %v1100_v0, %v1294_v20  ;;  %v612_v33 = vsel %vm545_vm2, %v1407_v28, 0.0 }
 0x109   : > { %568 = vadd.xlane.f32.xlu1 %v567_v59  ;;  %565 = vadd.xlane.f32.xlu0 %v564_v60  ;;  %v1390_v18 = vadd.f32 %v1294_v20, %v485_v1  ;;  %v1396_v21 = vadd.f32 %v1294_v20, %v533_v2  ;;  %v570_v25 = vsel %vm545_vm2, %v1387_v17, 0.0  ;;  %v606_v27 = vsel %vm545_vm2, %v1393_v19, 0.0 }
 0x10a   : > { %v579_v15 = vsel %vm545_vm2, %v1376_v12, 0.0  ;;  %v615_v32 = vsel %vm545_vm2, %v1410_v31, 0.0 }
 0x10b   : > { %v573_v22 = vsel %vm545_vm2, %v1390_v18, 0.0  ;;  %v609_v26 = vsel %vm545_vm2, %v1396_v21, 0.0 }
 0x10d   : > { %604 = vadd.xlane.f32.xlu1 %v603_v3  ;;  %601 = vadd.xlane.f32.xlu0 %v600_v4 }
 0x111   : > { %562 = vadd.xlane.f32.xlu1 %v561_v9  ;;  %559 = vadd.xlane.f32.xlu0 %v558_v10 }
 0x115   : > { %598 = vadd.xlane.f32.xlu1 %v597_v13  ;;  %595 = vadd.xlane.f32.xlu0 %v594_v14 }
 0x119   : > { %580 = vadd.xlane.f32.xlu1 %v579_v15  ;;  %577 = vadd.xlane.f32.xlu0 %v576_v16 }
 0x11d   : > { %574 = vadd.xlane.f32.xlu1 %v573_v22  ;;  %571 = vadd.xlane.f32.xlu0 %v570_v25 }
 0x121   : > { %610 = vadd.xlane.f32.xlu1 %v609_v26  ;;  %607 = vadd.xlane.f32.xlu0 %v606_v27 }
 0x125   : > { %616 = vadd.xlane.f32.xlu1 %v615_v32  ;;  %613 = vadd.xlane.f32.xlu0 %v612_v33 }
 0x186   : > { %v590_v34 = vpop.xlane.xlu0 %589  ;;  %v554_v37 = vpop.xlane.xlu1 %553 }
 0x187   : > { %v633_v38 = vmul.f32 0.03125, %v590_v34  ;;  %v621_v39 = vmul.f32 0.03125, %v554_v37 }
 0x189   : > { %v1417_v40 = vsub.f32 %v1300_v24, %v633_v38  ;;  %v1420_v20 = vsub.f32 %v1297_v23, %v621_v39 }
 0x18a   : > { %v557_v41 = vpop.xlane.xlu1 %556  ;;  %v548_v42 = vpop.xlane.xlu0 %547 }
 0x18b   : > { %v622_v43 = vmul.f32 0.03125, %v557_v41  ;;  %v619_v44 = vmul.f32 0.03125, %v548_v42  ;;  %v669_v47 = vmul.f32 %v1420_v20, %v1420_v20  ;;  %v681_v24 = vmul.f32 %v1417_v40, %v1417_v40 }
 0x18d   : > { %v1425_v48 = vsub.f32 %v1306_v30, %v622_v43  ;;  %v1428_v49 = vsub.f32 %v1303_v29, %v619_v44  ;;  %v697_v50 = vsel %vm545_vm2, %v669_v47, 0.0  ;;  %v733_v61 = vsel %vm545_vm2, %v681_v24, 0.0 }
 0x18e   : > { %v593_v23 = vpop.xlane.xlu1 %592  ;;  %698 = vadd.xlane.f32.xlu0 %v697_v50  ;;  %v584_v53 = vpop.xlane.xlu0 %583 }
 0x18f   : > { %v634_v54 = vmul.f32 0.03125, %v593_v23  ;;  %v631_v55 = vmul.f32 0.03125, %v584_v53  ;;  %v670_v56 = vmul.f32 %v1425_v48, %v1425_v48  ;;  %v667_v30 = vmul.f32 %v1428_v49, %v1428_v49 }
 0x191   : > { %v1438_v59 = vsub.f32 %v1316_v36, %v634_v54  ;;  %v1441_v29 = vsub.f32 %v1313_v35, %v631_v55  ;;  %v700_v60 = vsel %vm545_vm2, %v670_v56, 0.0  ;;  %v691_v3 = vsel %vm545_vm2, %v667_v30, 0.0 }
 0x192   : > { %v587_v62 = vpop.xlane.xlu1 %586  ;;  %701 = vadd.xlane.f32.xlu1 %v700_v60  ;;  %734 = vadd.xlane.f32.xlu0 %v733_v61  ;;  %v551_v63 = vpop.xlane.xlu0 %550 }
 0x193   : > { %v632_v0 = vmul.f32 0.03125, %v587_v62  ;;  %v620_v1 = vmul.f32 0.03125, %v551_v63  ;;  %v682_v2 = vmul.f32 %v1438_v59, %v1438_v59  ;;  %v679_v9 = vmul.f32 %v1441_v29, %v1441_v29 }
 0x195   : > { %v1449_v36 = vsub.f32 %v1326_v46, %v632_v0  ;;  %v1452_v35 = vsub.f32 %v1323_v45, %v620_v1  ;;  %v736_v4 = vsel %vm545_vm2, %v682_v2, 0.0  ;;  %v727_v25 = vsel %vm545_vm2, %v679_v9, 0.0 }
 0x196   : > { %v569_v10 = vpop.xlane.xlu1 %568  ;;  %737 = vadd.xlane.f32.xlu1 %v736_v4  ;;  %692 = vadd.xlane.f32.xlu0 %v691_v3  ;;  %v566_v13 = vpop.xlane.xlu0 %565 }
 0x197   : > { %v626_v14 = vmul.f32 0.03125, %v569_v10  ;;  %v625_v15 = vmul.f32 0.03125, %v566_v13  ;;  %v668_v16 = vmul.f32 %v1452_v35, %v1452_v35  ;;  %v680_v46 = vmul.f32 %v1449_v36, %v1449_v36 }
 0x199   : > { %v1462_v45 = vsub.f32 %v1336_v52, %v626_v14  ;;  %v1465_v22 = vsub.f32 %v1333_v51, %v625_v15  ;;  %v694_v26 = vsel %vm545_vm2, %v668_v16, 0.0  ;;  %v730_v38 = vsel %vm545_vm2, %v680_v46, 0.0 }
 0x19a   : > { %v605_v27 = vpop.xlane.xlu1 %604  ;;  %728 = vadd.xlane.f32.xlu0 %v727_v25  ;;  %695 = vadd.xlane.f32.xlu1 %v694_v26  ;;  %v602_v32 = vpop.xlane.xlu0 %601 }
 0x19b   : > { %v638_v33 = vmul.f32 0.03125, %v605_v27  ;;  %v637_v34 = vmul.f32 0.03125, %v602_v32  ;;  %v673_v37 = vmul.f32 %v1465_v22, %v1465_v22  ;;  %v674_v41 = vmul.f32 %v1462_v45, %v1462_v45 }
 0x19d   : > { %v1473_v52 = vsub.f32 %v1346_v58, %v638_v33  ;;  %v1476_v51 = vsub.f32 %v1343_v57, %v637_v34  ;;  %v709_v39 = vsel %vm545_vm2, %v673_v37, 0.0  ;;  %v712_v23 = vsel %vm545_vm2, %v674_v41, 0.0 }
 0x19e   : > { %v563_v42 = vpop.xlane.xlu1 %562  ;;  %731 = vadd.xlane.f32.xlu1 %v730_v38  ;;  %710 = vadd.xlane.f32.xlu0 %v709_v39  ;;  %v560_v43 = vpop.xlane.xlu0 %559 }
 0x19f   : > { %v624_v44 = vmul.f32 0.03125, %v563_v42  ;;  %v623_v47 = vmul.f32 0.03125, %v560_v43  ;;  %v685_v50 = vmul.f32 %v1476_v51, %v1476_v51  ;;  %v686_v58 = vmul.f32 %v1473_v52, %v1473_v52 }
 0x1a1   : > { %v1486_v57 = vsub.f32 %v1360_v6, %v624_v44  ;;  %v1489_v24 = vsub.f32 %v1357_v5, %v623_v47  ;;  %v745_v53 = vsel %vm545_vm2, %v685_v50, 0.0  ;;  %v748_v61 = vsel %vm545_vm2, %v686_v58, 0.0 }
 0x1a2   : > { %v599_v54 = vpop.xlane.xlu1 %598  ;;  %713 = vadd.xlane.f32.xlu1 %v712_v23  ;;  %746 = vadd.xlane.f32.xlu0 %v745_v53  ;;  %v596_v55 = vpop.xlane.xlu0 %595 }
 0x1a3   : > { %v636_v56 = vmul.f32 0.03125, %v599_v54  ;;  %v635_v30 = vmul.f32 0.03125, %v596_v55  ;;  %v671_v60 = vmul.f32 %v1489_v24, %v1489_v24  ;;  %v672_v63 = vmul.f32 %v1486_v57, %v1486_v57 }
 0x1a5   : > { %v1497_v6 = vsub.f32 %v1366_v8, %v636_v56  ;;  %v1500_v5 = vsub.f32 %v1363_v7, %v635_v30  ;;  %v703_v62 = vsel %vm545_vm2, %v671_v60, 0.0  ;;  %v706_v10 = vsel %vm545_vm2, %v672_v63, 0.0 }
 0x1a6   : > { %v581_v0 = vpop.xlane.xlu1 %580  ;;  %749 = vadd.xlane.f32.xlu1 %v748_v61  ;;  %704 = vadd.xlane.f32.xlu0 %v703_v62  ;;  %v578_v1 = vpop.xlane.xlu0 %577 }
 0x1a7   : > { %v630_v2 = vmul.f32 0.03125, %v581_v0  ;;  %v629_v3 = vmul.f32 0.03125, %v578_v1  ;;  %v683_v4 = vmul.f32 %v1500_v5, %v1500_v5  ;;  %v684_v8 = vmul.f32 %v1497_v6, %v1497_v6 }
 0x1a9   : > { %v1510_v7 = vsub.f32 %v1376_v12, %v630_v2  ;;  %v1513_v9 = vsub.f32 %v1373_v11, %v629_v3  ;;  %v739_v13 = vsel %vm545_vm2, %v683_v4, 0.0  ;;  %v742_v26 = vsel %vm545_vm2, %v684_v8, 0.0 }
 0x1aa   : > { %v575_v14 = vpop.xlane.xlu1 %574  ;;  %707 = vadd.xlane.f32.xlu1 %v706_v10  ;;  %740 = vadd.xlane.f32.xlu0 %v739_v13  ;;  %v572_v15 = vpop.xlane.xlu0 %571 }
 0x1ab   : > { %v628_v16 = vmul.f32 0.03125, %v575_v14  ;;  %v627_v46 = vmul.f32 0.03125, %v572_v15  ;;  %v677_v25 = vmul.f32 %v1513_v9, %v1513_v9  ;;  %v678_v32 = vmul.f32 %v1510_v7, %v1510_v7 }
 0x1ad   : > { %v1521_v12 = vsub.f32 %v1390_v18, %v628_v16  ;;  %v1524_v11 = vsub.f32 %v1387_v17, %v627_v46  ;;  %v721_v27 = vsel %vm545_vm2, %v677_v25, 0.0  ;;  %v724_v42 = vsel %vm545_vm2, %v678_v32, 0.0 }
 0x1ae   : > { %v611_v33 = vpop.xlane.xlu1 %610  ;;  %743 = vadd.xlane.f32.xlu1 %v742_v26  ;;  %722 = vadd.xlane.f32.xlu0 %v721_v27  ;;  %v608_v34 = vpop.xlane.xlu0 %607 }
 0x1af   : > { %v640_v37 = vmul.f32 0.03125, %v611_v33  ;;  %v639_v38 = vmul.f32 0.03125, %v608_v34  ;;  %v675_v39 = vmul.f32 %v1524_v11, %v1524_v11  ;;  %v676_v18 = vmul.f32 %v1521_v12, %v1521_v12  ;;  %v1563_v34 = vld [vmem:[%s1702_s3] ss:$0 sm:$0xff] }
 0x1b1   : > { %v1534_v17 = vsub.f32 %v1396_v21, %v640_v37  ;;  %v1537_v41 = vsub.f32 %v1393_v19, %v639_v38  ;;  %v715_v43 = vsel %vm545_vm2, %v675_v39, 0.0  ;;  %v718_v53 = vsel %vm545_vm2, %v676_v18, 0.0 }
 0x1b2   : > { %v617_v44 = vpop.xlane.xlu1 %616  ;;  %725 = vadd.xlane.f32.xlu1 %v724_v42  ;;  %716 = vadd.xlane.f32.xlu0 %v715_v43  ;;  %v614_v47 = vpop.xlane.xlu0 %613  ;;  %v1570_v43 = vld [vmem:[%s1703_s4] ss:$0 sm:$0xff] }
 0x1b3   : > { %v642_v50 = vmul.f32 0.03125, %v617_v44  ;;  %v641_v58 = vmul.f32 0.03125, %v614_v47  ;;  %v687_v23 = vmul.f32 %v1537_v41, %v1537_v41  ;;  %v688_v55 = vmul.f32 %v1534_v17, %v1534_v17 }
 0x1b5   : > { %v1545_v21 = vsub.f32 %v1410_v31, %v642_v50  ;;  %v1548_v19 = vsub.f32 %v1407_v28, %v641_v58  ;;  %v751_v54 = vsel %vm545_vm2, %v687_v23, 0.0  ;;  %v754_v30 = vsel %vm545_vm2, %v688_v55, 0.0 }
 0x1b6   : > { %719 = vadd.xlane.f32.xlu1 %v718_v53  ;;  %752 = vadd.xlane.f32.xlu0 %v751_v54 }
 0x1b7   : > { %v689_v56 = vmul.f32 %v1548_v19, %v1548_v19  ;;  %v690_v31 = vmul.f32 %v1545_v21, %v1545_v21 }
 0x1b9   : > { %v757_v60 = vsel %vm545_vm2, %v689_v56, 0.0  ;;  %v760_v28 = vsel %vm545_vm2, %v690_v31, 0.0 }
 0x1ba   : > { %755 = vadd.xlane.f32.xlu1 %v754_v30  ;;  %758 = vadd.xlane.f32.xlu0 %v757_v60 }
 0x1be   : > { %761 = vadd.xlane.f32.xlu1 %v760_v28 }
 0x21b   : > { %v699_v61 = vpop.xlane.xlu0 %698 }
 0x21c   : > { %v765_v62 = vmul.f32 0.03125, %v699_v61 }
 0x21e   : > { %v789_v63 = vadd.f32 1e-05, %v765_v62 }
 0x21f   : > { %v702_v0 = vpop.xlane.xlu1 %701  ;;  %v735_v1 = vpop.xlane.xlu0 %734 }
 0x220   : > { %1144 = vrsqrt.f32 %v789_v63  ;;  %v766_v2 = vmul.f32 0.03125, %v702_v0  ;;  %v777_v3 = vmul.f32 0.03125, %v735_v1 }
 0x222   : > { %v790_v4 = vadd.f32 1e-05, %v766_v2  ;;  %v801_v8 = vadd.f32 1e-05, %v777_v3 }
 0x223   : > { %v738_v10 = vpop.xlane.xlu1 %737  ;;  %v693_v13 = vpop.xlane.xlu0 %692 }
 0x224   : > { %1146 = vrsqrt.f32 %v790_v4  ;;  %v778_v14 = vmul.f32 0.03125, %v738_v10  ;;  %v763_v15 = vmul.f32 0.03125, %v693_v13 }
 0x225   : > { %1148 = vrsqrt.f32 %v801_v8 }
 0x226   : > { %v802_v16 = vadd.f32 1e-05, %v778_v14  ;;  %v787_v46 = vadd.f32 1e-05, %v763_v15 }
 0x227   : > { %v696_v25 = vpop.xlane.xlu1 %695  ;;  %v729_v26 = vpop.xlane.xlu0 %728 }
 0x228   : > { %1150 = vrsqrt.f32 %v802_v16  ;;  %v764_v27 = vmul.f32 0.03125, %v696_v25  ;;  %v775_v32 = vmul.f32 0.03125, %v729_v26 }
 0x229   : > { %1152 = vrsqrt.f32 %v787_v46 }
 0x22a   : > { %v1145_v33 = vpop.eup %1144  ;;  %v788_v37 = vadd.f32 1e-05, %v764_v27  ;;  %v799_v38 = vadd.f32 1e-05, %v775_v32 }
 0x22b   : > { %v837_v39 = vmul.f32 %v1145_v33, %v1420_v20  ;;  %v732_v18 = vpop.xlane.xlu1 %731  ;;  %v711_v42 = vpop.xlane.xlu0 %710 }
 0x22c   : > { %1154 = vrsqrt.f32 %v788_v37  ;;  %v776_v44 = vmul.f32 0.03125, %v732_v18  ;;  %v769_v47 = vmul.f32 0.03125, %v711_v42 }
 0x22d   : > { %v868_v50 = vmul.f32 %v1563_v34, %v837_v39  ;;  %1156 = vrsqrt.f32 %v799_v38 }
 0x22e   : > { %v1147_v58 = vpop.eup %1146  ;;  %v800_v20 = vadd.f32 1e-05, %v776_v44  ;;  %v793_v23 = vadd.f32 1e-05, %v769_v47 }
 0x22f   : > { %v1149_v53 = vpop.eup %1148  ;;  %v899_v54 = vadd.f32 %v1570_v43, %v868_v50  ;;  %v838_v55 = vmul.f32 %v1147_v58, %v1425_v48  ;;  %v714_v56 = vpop.xlane.xlu1 %713 }
 0x230   : > { %v747_v30 = vpop.xlane.xlu0 %746  ;;  %v849_v60 = vmul.f32 %v1149_v53, %v1417_v40  ;;  %1158 = vrsqrt.f32 %v800_v20  ;;  %v770_v31 = vmul.f32 0.03125, %v714_v56 }
 0x231   : > { %v781_v28 = vmul.f32 0.03125, %v747_v30  ;;  %923 = vst.msk [vmem:[%s1576_s24 + $0x10] sm:$0xff] %vm545_vm2, %v899_v54  ;;  %v869_v61 = vmul.f32 %v1563_v34, %v838_v55  ;;  %1160 = vrsqrt.f32 %v793_v23 }
 0x232   : > { %v1151_v62 = vpop.eup %1150  ;;  %v880_v63 = vmul.f32 %v1563_v34, %v849_v60  ;;  %v794_v0 = vadd.f32 1e-05, %v770_v31 }
 0x233   : > { %v805_v1 = vadd.f32 1e-05, %v781_v28  ;;  %v1153_v48 = vpop.eup %1152  ;;  %v900_v2 = vadd.f32 %v1570_v43, %v869_v61  ;;  %v850_v40 = vmul.f32 %v1151_v62, %v1438_v59  ;;  %v750_v3 = vpop.xlane.xlu1 %749 }
 0x234   : > { %v705_v4 = vpop.xlane.xlu0 %704  ;;  %v911_v8 = vadd.f32 %v1570_v43, %v880_v63  ;;  %v835_v10 = vmul.f32 %v1153_v48, %v1428_v49  ;;  %1162 = vrsqrt.f32 %v794_v0  ;;  %v782_v13 = vmul.f32 0.03125, %v750_v3 }
 0x235   : > { %924 = vst.msk [vmem:[%s1576_s24 + $0x18] sm:$0xff] %vm545_vm2, %v900_v2  ;;  %v881_v14 = vmul.f32 %v1563_v34, %v850_v40  ;;  %1164 = vrsqrt.f32 %v805_v1  ;;  %v767_v15 = vmul.f32 0.03125, %v705_v4 }
 0x236   : > { %v1155_v16 = vpop.eup %1154  ;;  %935 = vst.msk [vmem:[%s1576_s24 + $0x70] sm:$0xff] %vm545_vm2, %v911_v8  ;;  %v866_v59 = vmul.f32 %v1563_v34, %v835_v10  ;;  %v806_v46 = vadd.f32 1e-05, %v782_v13 }
 0x237   : > { %v1157_v25 = vpop.eup %1156  ;;  %v912_v26 = vadd.f32 %v1570_v43, %v881_v14  ;;  %v836_v49 = vmul.f32 %v1155_v16, %v1452_v35  ;;  %v791_v27 = vadd.f32 1e-05, %v767_v15  ;;  %v708_v32 = vpop.xlane.xlu1 %707 }
 0x238   : > { %v741_v33 = vpop.xlane.xlu0 %740  ;;  %v897_v37 = vadd.f32 %v1570_v43, %v866_v59  ;;  %v847_v38 = vmul.f32 %v1157_v25, %v1441_v29  ;;  %1166 = vrsqrt.f32 %v806_v46  ;;  %v768_v39 = vmul.f32 0.03125, %v708_v32 }
 0x239   : > { %936 = vst.msk [vmem:[%s1576_s24 + $0x78] sm:$0xff] %vm545_vm2, %v912_v26  ;;  %v867_v18 = vmul.f32 %v1563_v34, %v836_v49  ;;  %1168 = vrsqrt.f32 %v791_v27  ;;  %v779_v42 = vmul.f32 0.03125, %v741_v33 }
 0x23a   : > { %v1159_v44 = vpop.eup %1158  ;;  %921 = vst.msk [vmem:[%s1576_s24] sm:$0xff] %vm545_vm2, %v897_v37  ;;  %v878_v35 = vmul.f32 %v1563_v34, %v847_v38  ;;  %v792_v47 = vadd.f32 1e-05, %v768_v39 }
 0x23b   : > { %v1161_v50 = vpop.eup %1160  ;;  %v898_v58 = vadd.f32 %v1570_v43, %v867_v18  ;;  %v848_v29 = vmul.f32 %v1159_v44, %v1449_v36  ;;  %v803_v20 = vadd.f32 1e-05, %v779_v42  ;;  %v744_v23 = vpop.xlane.xlu1 %743 }
 0x23c   : > { %v723_v53 = vpop.xlane.xlu0 %722  ;;  %v909_v54 = vadd.f32 %v1570_v43, %v878_v35  ;;  %v841_v55 = vmul.f32 %v1161_v50, %v1465_v22  ;;  %1170 = vrsqrt.f32 %v792_v47  ;;  %v780_v56 = vmul.f32 0.03125, %v744_v23 }
 0x23d   : > { %922 = vst.msk [vmem:[%s1576_s24 + $0x8] sm:$0xff] %vm545_vm2, %v898_v58  ;;  %v879_v30 = vmul.f32 %v1563_v34, %v848_v29  ;;  %1172 = vrsqrt.f32 %v803_v20  ;;  %v773_v60 = vmul.f32 0.03125, %v723_v53 }
 0x23e   : > { %v1163_v31 = vpop.eup %1162  ;;  %933 = vst.msk [vmem:[%s1576_s24 + $0x60] sm:$0xff] %vm545_vm2, %v909_v54  ;;  %v872_v36 = vmul.f32 %v1563_v34, %v841_v55  ;;  %v804_v28 = vadd.f32 1e-05, %v780_v56 }
 0x23f   : > { %v1165_v61 = vpop.eup %1164  ;;  %v910_v62 = vadd.f32 %v1570_v43, %v879_v30  ;;  %v842_v22 = vmul.f32 %v1163_v31, %v1462_v45  ;;  %v797_v63 = vadd.f32 1e-05, %v773_v60  ;;  %v726_v0 = vpop.xlane.xlu1 %725 }
 0x240   : > { %v717_v1 = vpop.xlane.xlu0 %716  ;;  %v903_v48 = vadd.f32 %v1570_v43, %v872_v36  ;;  %v853_v2 = vmul.f32 %v1165_v61, %v1476_v51  ;;  %1174 = vrsqrt.f32 %v804_v28  ;;  %v774_v40 = vmul.f32 0.03125, %v726_v0 }
 0x241   : > { %934 = vst.msk [vmem:[%s1576_s24 + $0x68] sm:$0xff] %vm545_vm2, %v910_v62  ;;  %v873_v3 = vmul.f32 %v1563_v34, %v842_v22  ;;  %1176 = vrsqrt.f32 %v797_v63  ;;  %v771_v4 = vmul.f32 0.03125, %v717_v1 }
 0x242   : > { %v1167_v8 = vpop.eup %1166  ;;  %927 = vst.msk [vmem:[%s1576_s24 + $0x30] sm:$0xff] %vm545_vm2, %v903_v48  ;;  %v884_v45 = vmul.f32 %v1563_v34, %v853_v2  ;;  %v798_v10 = vadd.f32 1e-05, %v774_v40 }
 0x243   : > { %v1169_v13 = vpop.eup %1168  ;;  %v904_v14 = vadd.f32 %v1570_v43, %v873_v3  ;;  %v854_v51 = vmul.f32 %v1167_v8, %v1473_v52  ;;  %v795_v15 = vadd.f32 1e-05, %v771_v4  ;;  %v720_v16 = vpop.xlane.xlu1 %719 }
 0x244   : > { %v753_v59 = vpop.xlane.xlu0 %752  ;;  %v915_v46 = vadd.f32 %v1570_v43, %v884_v45  ;;  %v839_v25 = vmul.f32 %v1169_v13, %v1489_v24  ;;  %1178 = vrsqrt.f32 %v798_v10  ;;  %v772_v26 = vmul.f32 0.03125, %v720_v16 }
 0x245   : > { %928 = vst.msk [vmem:[%s1576_s24 + $0x38] sm:$0xff] %vm545_vm2, %v904_v14  ;;  %v885_v49 = vmul.f32 %v1563_v34, %v854_v51  ;;  %1180 = vrsqrt.f32 %v795_v15  ;;  %v783_v27 = vmul.f32 0.03125, %v753_v59 }
 0x246   : > { %v1171_v32 = vpop.eup %1170  ;;  %939 = vst.msk [vmem:[%s1576_s24 + $0x90] sm:$0xff] %vm545_vm2, %v915_v46  ;;  %v870_v52 = vmul.f32 %v1563_v34, %v839_v25  ;;  %v796_v33 = vadd.f32 1e-05, %v772_v26 }
 0x247   : > { %v1173_v37 = vpop.eup %1172  ;;  %v916_v38 = vadd.f32 %v1570_v43, %v885_v49  ;;  %v840_v24 = vmul.f32 %v1171_v32, %v1486_v57  ;;  %v807_v39 = vadd.f32 1e-05, %v783_v27  ;;  %v756_v18 = vpop.xlane.xlu1 %755 }
 0x248   : > { %v759_v42 = vpop.xlane.xlu0 %758  ;;  %v901_v44 = vadd.f32 %v1570_v43, %v870_v52  ;;  %v851_v35 = vmul.f32 %v1173_v37, %v1500_v5  ;;  %1182 = vrsqrt.f32 %v796_v33  ;;  %v784_v47 = vmul.f32 0.03125, %v756_v18 }
 0x249   : > { %940 = vst.msk [vmem:[%s1576_s24 + $0x98] sm:$0xff] %vm545_vm2, %v916_v38  ;;  %v871_v50 = vmul.f32 %v1563_v34, %v840_v24  ;;  %1184 = vrsqrt.f32 %v807_v39  ;;  %v785_v58 = vmul.f32 0.03125, %v759_v42 }
 0x24a   : > { %v1175_v29 = vpop.eup %1174  ;;  %925 = vst.msk [vmem:[%s1576_s24 + $0x20] sm:$0xff] %vm545_vm2, %v901_v44  ;;  %v882_v57 = vmul.f32 %v1563_v34, %v851_v35  ;;  %v808_v20 = vadd.f32 1e-05, %v784_v47 }
 0x24b   : > { %v1177_v23 = vpop.eup %1176  ;;  %v902_v53 = vadd.f32 %v1570_v43, %v871_v50  ;;  %v852_v5 = vmul.f32 %v1175_v29, %v1497_v6  ;;  %v809_v54 = vadd.f32 1e-05, %v785_v58  ;;  %v762_v55 = vpop.xlane.xlu1 %761 }
 0x24c   : > { %v913_v56 = vadd.f32 %v1570_v43, %v882_v57  ;;  %v845_v30 = vmul.f32 %v1177_v23, %v1513_v9  ;;  %1186 = vrsqrt.f32 %v808_v20  ;;  %v786_v60 = vmul.f32 0.03125, %v762_v55 }
 0x24d   : > { %926 = vst.msk [vmem:[%s1576_s24 + $0x28] sm:$0xff] %vm545_vm2, %v902_v53  ;;  %v883_v31 = vmul.f32 %v1563_v34, %v852_v5  ;;  %1188 = vrsqrt.f32 %v809_v54 }
 0x24e   : > { %v1179_v36 = vpop.eup %1178  ;;  %937 = vst.msk [vmem:[%s1576_s24 + $0x80] sm:$0xff] %vm545_vm2, %v913_v56  ;;  %v876_v6 = vmul.f32 %v1563_v34, %v845_v30  ;;  %v810_v28 = vadd.f32 1e-05, %v786_v60 }
 0x24f   : > { %v1181_v61 = vpop.eup %1180  ;;  %v914_v62 = vadd.f32 %v1570_v43, %v883_v31  ;;  %v846_v9 = vmul.f32 %v1179_v36, %v1510_v7 }
 0x250   : > { %v907_v22 = vadd.f32 %v1570_v43, %v876_v6  ;;  %v843_v63 = vmul.f32 %v1181_v61, %v1524_v11  ;;  %1190 = vrsqrt.f32 %v810_v28 }
 0x251   : > { %938 = vst.msk [vmem:[%s1576_s24 + $0x88] sm:$0xff] %vm545_vm2, %v914_v62  ;;  %v877_v0 = vmul.f32 %v1563_v34, %v846_v9 }
 0x252   : > { %v1183_v1 = vpop.eup %1182  ;;  %931 = vst.msk [vmem:[%s1576_s24 + $0x50] sm:$0xff] %vm545_vm2, %v907_v22  ;;  %v874_v48 = vmul.f32 %v1563_v34, %v843_v63 }
 0x253   : > { %v1185_v2 = vpop.eup %1184  ;;  %v908_v40 = vadd.f32 %v1570_v43, %v877_v0  ;;  %v844_v7 = vmul.f32 %v1183_v1, %v1521_v12 }
 0x254   : > { %v905_v3 = vadd.f32 %v1570_v43, %v874_v48  ;;  %v855_v11 = vmul.f32 %v1185_v2, %v1537_v41 }
 0x255   : > { %932 = vst.msk [vmem:[%s1576_s24 + $0x58] sm:$0xff] %vm545_vm2, %v908_v40  ;;  %v875_v4 = vmul.f32 %v1563_v34, %v844_v7 }
 0x256   : > { %v1187_v8 = vpop.eup %1186  ;;  %929 = vst.msk [vmem:[%s1576_s24 + $0x40] sm:$0xff] %vm545_vm2, %v905_v3  ;;  %v886_v45 = vmul.f32 %v1563_v34, %v855_v11 }
 0x257   : > { %v1189_v10 = vpop.eup %1188  ;;  %v906_v13 = vadd.f32 %v1570_v43, %v875_v4  ;;  %v856_v12 = vmul.f32 %v1187_v8, %v1534_v17 }
 0x258   : > { %v917_v14 = vadd.f32 %v1570_v43, %v886_v45  ;;  %v857_v41 = vmul.f32 %v1189_v10, %v1548_v19 }
 0x259   : > { %930 = vst.msk [vmem:[%s1576_s24 + $0x48] sm:$0xff] %vm545_vm2, %v906_v13  ;;  %v887_v51 = vmul.f32 %v1563_v34, %v856_v12 }
 0x25a   : > { %v1191_v15 = vpop.eup %1190  ;;  %941 = vst.msk [vmem:[%s1576_s24 + $0xa0] sm:$0xff] %vm545_vm2, %v917_v14  ;;  %v888_v16 = vmul.f32 %v1563_v34, %v857_v41 }
 0x25b   : > { %v918_v59 = vadd.f32 %v1570_v43, %v887_v51  ;;  %v858_v46 = vmul.f32 %v1191_v15, %v1545_v21 }
 0x25c   : > { %v919_v25 = vadd.f32 %v1570_v43, %v888_v16 }
 0x25d   : > { %942 = vst.msk [vmem:[%s1576_s24 + $0xa8] sm:$0xff] %vm545_vm2, %v918_v59  ;;  %v889_v17 = vmul.f32 %v1563_v34, %v858_v46 }
 0x25e   : > { %943 = vst.msk [vmem:[%s1576_s24 + $0xb0] sm:$0xff] %vm545_vm2, %v919_v25 }
 0x25f   : > { %v920_v19 = vadd.f32 %v1570_v43, %v889_v17 }
 0x261   : > { %944 = vst.msk [vmem:[%s1576_s24 + $0xb8] sm:$0xff] %vm545_vm2, %v920_v19 }
 0x262 PF: > { %s15_s18 = sadd.s32 1, %s1198_s18  }
 0x263   : > { %p12_p4 = scmp.ge.s32.totalorder %s15_s18, 4  }
 0x265   :  { %14 = sbr.rel (!%p12_p4) target bundleno = 1 (0x1), region = 70 }

</bundles_post_ra>
